<compile_context>
chip_gen: v7x
topology: tpu7x:2x2x1
jax: 0.10.0
libtpu: 0.0.40
codegen_flags: <defaults>
</compile_context>

<pallas_src>
import functools

import jax
import jax.numpy as jnp
from jax.experimental import pallas as pl
from jax.experimental.pallas import tpu as pltpu


# Scoped-VMEM sizing: 32 MiB is safe on all generations (v5e/v6e 128 MiB
# physical, v7x 64 MiB physical) and raises v5e's 16 MiB scoped default.
_VMEM_LIMIT_BYTES = 32 * 1024 * 1024
# Budget used to size the point tile; leaves headroom for compiler scratch,
# double-buffer bookkeeping and the resident weight/bias blocks.
_VMEM_TILE_BUDGET = 20 * 1024 * 1024
_MAX_TILE_N = 8192


# ----------------------------- Pallas kernel --------------------------------
def _mlp_kernel(*refs, n_layers):
    # refs = [x_ref, w1T, b1, w2T, b2, ..., wLT, bL, o_ref]
    x_ref = refs[0]
    o_ref = refs[-1]
    param_refs = refs[1:-1]

    h = x_ref[0, :, :].astype(jnp.float32)           # (2, tile_n)
    for li in range(n_layers):
        wt = param_refs[2 * li][...]                  # (C_out, C_in)
        b = param_refs[2 * li + 1][...]               # (C_out, 1), broadcasts over lanes
        c_in = wt.shape[1]
        if c_in == 2:
            # K=2 contraction: two VPU broadcast multiply-adds are cheaper than
            # an almost-empty MXU pass.  (Any width-2 hidden layer would also
            # take this path — still correct, just unusual.)
            wtf = wt.astype(jnp.float32)
            h = wtf[:, 0:1] * h[0:1, :] + wtf[:, 1:2] * h[1:2, :] + b
        else:
            # Matmul dtype follows the (possibly bf16) weight dtype; always
            # accumulate in f32 on the MXU.
            h = jnp.dot(wt, h.astype(wt.dtype),
                        preferred_element_type=jnp.float32) + b
        if li < n_layers - 1:
            h = jnp.maximum(h, 0.0)                   # ReLU on all but last layer
    o_ref[0, :, :] = h.astype(o_ref.dtype)


# ----------------------------- tile-size policy ------------------------------
def _pick_tile_n(N, B, channels):
    """Pick the point-tile width from a VMEM budget.

    Peak f32 VMEM per point ~= double-buffered input (2 rows) + double-buffered
    output (feat_dim rows) + the widest pair of consecutive activations held
    live inside the kernel.  A big tile amortizes the ~0.35 us per-grid-step
    overhead (the dominant loss at tile_n=1024 per the review).
    """
    c0, cf = channels[0], channels[-1]
    widest_pair = max(channels[i] + channels[i + 1] for i in range(len(channels) - 1))
    per_point_bytes = 4 * (2 * c0 + 2 * cf + widest_pair)
    tile = _VMEM_TILE_BUDGET // per_point_bytes
    # Don't over-pad tiny inputs; keep a multiple of 128 for lane-dense stores.
    tile = min(tile, _MAX_TILE_N, pl.cdiv(N, 128) * 128)
    tile = max(128, (tile // 128) * 128)
    # Guarantee >= 2 parallel grid steps so both v7x TensorCores get work
    # (costs at most one extra ~0.35 us step on 1-TC v5e/v6e).
    while B * pl.cdiv(N, tile) < 2 and tile > 128:
        tile = max(128, ((tile // 2) // 128) * 128)
    return tile


# --------------------------------- wrapper -----------------------------------
def coord_encoder_apply(coords, weights, biases, *, tile_n=None,
                        use_bf16_matmul=False, out_dtype=jnp.float32):
    """coords: (B, 2, *spatial) float32 -> (B, feature_dim, N) (NCL, like PyTorch)."""
    B = coords.shape[0]
    C_in = coords.shape[1]
    assert C_in == 2, "CoordEncoder expects 2 input channels (x, y coords)"

    x = coords.reshape(B, C_in, -1)                   # (B, 2, N)  == coords.view
    N = x.shape[-1]

    n_layers = len(weights)
    channels = [C_in] + [w.shape[1] for w in weights]
    feat_dim = channels[-1]

    if tile_n is None:
        tile_n = _pick_tile_n(N, B, channels)
    else:
        tile_n = max(128, (tile_n // 128) * 128)
    n_tiles = pl.cdiv(N, tile_n)                      # ragged last tile is masked

    # Weights pre-transposed to (C_out, C_in) so matmuls are W^T @ H (channels
    # on sublanes, points on lanes); biases become (C_out, 1) columns.  These
    # small constants use a constant index_map, so they are DMA'd once and
    # stay resident in VMEM across grid steps.
    in_specs = [pl.BlockSpec((1, C_in, tile_n), lambda b, n: (b, 0, n))]
    params = []
    for li, (w, bias) in enumerate(zip(weights, biases)):
        wt = jnp.transpose(w)                         # (C_out, C_in)
        if use_bf16_matmul and li > 0:
            # Halves MXU pass count & operand VMEM; layer 0 stays f32 on the VPU.
            wt = wt.astype(jnp.bfloat16)
        bcol = bias.reshape(-1, 1).astype(jnp.float32)
        in_specs.append(pl.BlockSpec(wt.shape, lambda b, n: (0, 0)))
        in_specs.append(pl.BlockSpec(bcol.shape, lambda b, n: (0, 0)))
        params.append(wt)
        params.append(bcol)

    out_spec = pl.BlockSpec((1, feat_dim, tile_n), lambda b, n: (b, 0, n))

    # Advisory cost estimate so XLA can schedule/overlap around this call.
    flops = 2 * B * N * sum(channels[i] * channels[i + 1] for i in range(n_layers))
    param_bytes = sum(int(p.size) * p.dtype.itemsize for p in params)
    bytes_accessed = (4 * B * N * C_in
                      + jnp.dtype(out_dtype).itemsize * B * N * feat_dim
                      + param_bytes)

    kernel = functools.partial(_mlp_kernel, n_layers=n_layers)

    out = pl.pallas_call(
        kernel,
        out_shape=jax.ShapeDtypeStruct((B, feat_dim, N), out_dtype),
        grid_spec=pltpu.PrefetchScalarGridSpec(
            num_scalar_prefetch=0,
            grid=(B, n_tiles),
            in_specs=in_specs,
            out_specs=out_spec,
        ),
        compiler_params=pltpu.CompilerParams(
            dimension_semantics=("parallel", "parallel"),
            vmem_limit_bytes=_VMEM_LIMIT_BYTES),
        cost_estimate=pl.CostEstimate(
            flops=flops, transcendentals=0, bytes_accessed=bytes_accessed),
    )(x, *params)

    return out                                        # (B, F, N), no post-slice


# ------------------------- deterministic parameters --------------------------
def init_coord_encoder_params(key, layers, feature_dim):
    """Mimics Conv1d(kernel_size=1): W (C_in, C_out), b (C_out,). PyTorch-style
    uniform(-1/sqrt(fan_in), 1/sqrt(fan_in)) init; last bias zeroed."""
    channels = [2] + list(layers) + [feature_dim]
    weights, biases = [], []
    for i in range(1, len(channels)):
        c_in, c_out = channels[i - 1], channels[i]
        key, kw, kb = jax.random.split(key, 3)
        bound = 1.0 / jnp.sqrt(jnp.float32(c_in))
        w = jax.random.uniform(kw, (c_in, c_out), jnp.float32, -bound, bound)
        b = jax.random.uniform(kb, (c_out,), jnp.float32, -bound, bound)
        if i == len(channels) - 1:
            b = jnp.zeros((c_out,), jnp.float32)      # nn.init.constant_(bias, 0)
        weights.append(w)
        biases.append(b)
    return weights, biases


# ----------------------------- reference (JAX) -------------------------------
def coord_encoder_ref(coords, weights, biases):
    B = coords.shape[0]
    x = coords.reshape(B, 2, -1)                      # (B, 2, N)
    h = jnp.transpose(x, (0, 2, 1))                   # (B, N, 2)
    for li, (w, b) in enumerate(zip(weights, biases)):
        h = h @ w + b
        if li < len(weights) - 1:
            h = jnp.maximum(h, 0.0)
    return jnp.transpose(h, (0, 2, 1))                # (B, F, N)


# ---------------------------------- main --------------------------------------
if __name__ == "__main__":
    key = jax.random.PRNGKey(0)
    k_x, k_p, k_x2 = jax.random.split(key, 3)

    layers = [32, 64]
    feature_dim = 32
    weights, biases = init_coord_encoder_params(k_p, layers, feature_dim)

    # Case 1: coords (B, 2, H, W) with N a multiple of 128.
    B, H, W = 2, 16, 16
    coords = jax.random.normal(k_x, (B, 2, H, W), jnp.float32)
    out = jax.block_until_ready(coord_encoder_apply(coords, weights, biases))
    ref = coord_encoder_ref(coords, weights, biases)
    assert out.shape == (B, feature_dim, H * W), out.shape
    assert jnp.allclose(out, ref, atol=1e-5, rtol=1e-5), \
        float(jnp.max(jnp.abs(out - ref)))

    # Case 2: ragged N (130 points, B=1) exercises the masked last tile and the
    # >=2-grid-step rule with no pad / no post-kernel slice.
    coords2 = jax.random.normal(k_x2, (1, 2, 10, 13), jnp.float32)
    out2 = jax.block_until_ready(coord_encoder_apply(coords2, weights, biases))
    ref2 = coord_encoder_ref(coords2, weights, biases)
    assert out2.shape == (1, feature_dim, 130), out2.shape
    assert jnp.allclose(out2, ref2, atol=1e-5, rtol=1e-5), \
        float(jnp.max(jnp.abs(out2 - ref2)))

    print("KERNEL_OK")
</pallas_src>

<mosaic_0001>
module attributes {stable_mosaic.version = 11 : i64} {
  func.func @_mlp_kernel(%arg0: i32, %arg1: i32, %arg2: memref<1x2x256xf32, #tpu.memory_space<vmem>>, %arg3: memref<32x2xf32, #tpu.memory_space<vmem>>, %arg4: memref<32x1xf32, #tpu.memory_space<vmem>>, %arg5: memref<64x32xf32, #tpu.memory_space<vmem>>, %arg6: memref<64x1xf32, #tpu.memory_space<vmem>>, %arg7: memref<32x64xf32, #tpu.memory_space<vmem>>, %arg8: memref<32x1xf32, #tpu.memory_space<vmem>>, %arg9: memref<1x32x256xf32, #tpu.memory_space<vmem>>) attributes {dimension_semantics = [#tpu.dimension_semantics<parallel>, #tpu.dimension_semantics<parallel>], iteration_bounds = array<i64: 2, 1>, scalar_prefetch = 0 : i64, scratch_operands = 0 : i64, tpu.core_type = #tpu.core_type<tc>, window_params = [{transform_indices = @transform_0, window_bounds = array<i64: 1, 2, 256>}, {pipeline_mode = #tpu.pipeline_mode<synchronous>, transform_indices = @transform_1, window_bounds = array<i64: 32, 2>}, {pipeline_mode = #tpu.pipeline_mode<synchronous>, transform_indices = @transform_2, window_bounds = array<i64: 32, 1>}, {pipeline_mode = #tpu.pipeline_mode<synchronous>, transform_indices = @transform_3, window_bounds = array<i64: 64, 32>}, {pipeline_mode = #tpu.pipeline_mode<synchronous>, transform_indices = @transform_4, window_bounds = array<i64: 64, 1>}, {pipeline_mode = #tpu.pipeline_mode<synchronous>, transform_indices = @transform_5, window_bounds = array<i64: 32, 64>}, {pipeline_mode = #tpu.pipeline_mode<synchronous>, transform_indices = @transform_6, window_bounds = array<i64: 32, 1>}, {transform_indices = @transform_7, window_bounds = array<i64: 1, 32, 256>}]} {
    %c0 = arith.constant 0 : index
    %c0_0 = arith.constant 0 : index
    %c0_1 = arith.constant 0 : index
    %0 = vector.load %arg2[%c0, %c0_0, %c0_1] : memref<1x2x256xf32, #tpu.memory_space<vmem>>, vector<1x2x256xf32>
    %1 = vector.shape_cast %0 : vector<1x2x256xf32> to vector<2x256xf32>
    %c0_2 = arith.constant 0 : index
    %c0_3 = arith.constant 0 : index
    %2 = vector.load %arg3[%c0_2, %c0_3] : memref<32x2xf32, #tpu.memory_space<vmem>>, vector<32x2xf32>
    %c0_4 = arith.constant 0 : index
    %c0_5 = arith.constant 0 : index
    %3 = vector.load %arg4[%c0_4, %c0_5] : memref<32x1xf32, #tpu.memory_space<vmem>>, vector<32x1xf32>
    %4 = vector.extract_strided_slice %2 {offsets = [0, 0], sizes = [32, 1], strides = [1, 1]} : vector<32x2xf32> to vector<32x1xf32>
    %5 = vector.extract_strided_slice %1 {offsets = [0, 0], sizes = [1, 256], strides = [1, 1]} : vector<2x256xf32> to vector<1x256xf32>
    %6 = vector.broadcast %4 : vector<32x1xf32> to vector<32x256xf32>
    %7 = vector.broadcast %5 : vector<1x256xf32> to vector<32x256xf32>
    %8 = arith.mulf %6, %7 : vector<32x256xf32>
    %9 = vector.extract_strided_slice %2 {offsets = [0, 1], sizes = [32, 1], strides = [1, 1]} : vector<32x2xf32> to vector<32x1xf32>
    %10 = vector.extract_strided_slice %1 {offsets = [1, 0], sizes = [1, 256], strides = [1, 1]} : vector<2x256xf32> to vector<1x256xf32>
    %11 = vector.broadcast %9 : vector<32x1xf32> to vector<32x256xf32>
    %12 = vector.broadcast %10 : vector<1x256xf32> to vector<32x256xf32>
    %13 = arith.mulf %11, %12 : vector<32x256xf32>
    %14 = arith.addf %8, %13 : vector<32x256xf32>
    %15 = vector.broadcast %3 : vector<32x1xf32> to vector<32x256xf32>
    %16 = arith.addf %14, %15 : vector<32x256xf32>
    %cst = arith.constant 0.000000e+00 : f32
    %17 = vector.broadcast %cst : f32 to vector<32x256xf32>
    %18 = arith.maximumf %16, %17 : vector<32x256xf32>
    %c0_6 = arith.constant 0 : index
    %c0_7 = arith.constant 0 : index
    %19 = vector.load %arg5[%c0_6, %c0_7] : memref<64x32xf32, #tpu.memory_space<vmem>>, vector<64x32xf32>
    %c0_8 = arith.constant 0 : index
    %c0_9 = arith.constant 0 : index
    %20 = vector.load %arg6[%c0_8, %c0_9] : memref<64x1xf32, #tpu.memory_space<vmem>>, vector<64x1xf32>
    %cst_10 = arith.constant dense<0.000000e+00> : vector<64x256xf32>
    %21 = tpu.matmul %19, %18, %cst_10 {dimension_numbers = #tpu.dot_dimension_numbers<[1], [0], [0], [1], [0, 0, 1, 1], [], []>} : vector<64x32xf32>, vector<32x256xf32>, vector<64x256xf32> -> vector<64x256xf32>
    %22 = vector.broadcast %20 : vector<64x1xf32> to vector<64x256xf32>
    %23 = arith.addf %21, %22 : vector<64x256xf32>
    %cst_11 = arith.constant 0.000000e+00 : f32
    %24 = vector.broadcast %cst_11 : f32 to vector<64x256xf32>
    %25 = arith.maximumf %23, %24 : vector<64x256xf32>
    %c0_12 = arith.constant 0 : index
    %c0_13 = arith.constant 0 : index
    %26 = vector.load %arg7[%c0_12, %c0_13] : memref<32x64xf32, #tpu.memory_space<vmem>>, vector<32x64xf32>
    %c0_14 = arith.constant 0 : index
    %c0_15 = arith.constant 0 : index
    %27 = vector.load %arg8[%c0_14, %c0_15] : memref<32x1xf32, #tpu.memory_space<vmem>>, vector<32x1xf32>
    %cst_16 = arith.constant dense<0.000000e+00> : vector<32x256xf32>
    %28 = tpu.matmul %26, %25, %cst_16 {dimension_numbers = #tpu.dot_dimension_numbers<[1], [0], [0], [1], [0, 0, 1, 1], [], []>} : vector<32x64xf32>, vector<64x256xf32>, vector<32x256xf32> -> vector<32x256xf32>
    %29 = vector.broadcast %27 : vector<32x1xf32> to vector<32x256xf32>
    %30 = arith.addf %28, %29 : vector<32x256xf32>
    %c0_17 = arith.constant 0 : index
    %c0_18 = arith.constant 0 : index
    %c0_19 = arith.constant 0 : index
    %31 = vector.load %arg9[%c0_17, %c0_18, %c0_19] : memref<1x32x256xf32, #tpu.memory_space<vmem>>, vector<1x32x256xf32>
    %32 = vector.shape_cast %31 : vector<1x32x256xf32> to vector<32x256xf32>
    %33 = vector.shape_cast %30 : vector<32x256xf32> to vector<1x32x256xf32>
    tpu.vector_store %arg9[%c0_17, %c0_18, %c0_19], %33 {strides = array<i32>} : memref<1x32x256xf32, #tpu.memory_space<vmem>>, vector<1x32x256xf32>,
    return
  }
  func.func @transform_0(%arg0: i32, %arg1: i32) -> (i32, i32, i32) {
    %c0_i32 = arith.constant 0 : i32
    %c0_i32_0 = arith.constant 0 : i32
    return %arg0, %c0_i32, %arg1 : i32, i32, i32
  }
  func.func @transform_1(%arg0: i32, %arg1: i32) -> (i32, i32) {
    %c0_i32 = arith.constant 0 : i32
    %c0_i32_0 = arith.constant 0 : i32
    %c0_i32_1 = arith.constant 0 : i32
    return %c0_i32, %c0_i32_0 : i32, i32
  }
  func.func @transform_2(%arg0: i32, %arg1: i32) -> (i32, i32) {
    %c0_i32 = arith.constant 0 : i32
    %c0_i32_0 = arith.constant 0 : i32
    %c0_i32_1 = arith.constant 0 : i32
    return %c0_i32, %c0_i32_0 : i32, i32
  }
  func.func @transform_3(%arg0: i32, %arg1: i32) -> (i32, i32) {
    %c0_i32 = arith.constant 0 : i32
    %c0_i32_0 = arith.constant 0 : i32
    %c0_i32_1 = arith.constant 0 : i32
    return %c0_i32, %c0_i32_0 : i32, i32
  }
  func.func @transform_4(%arg0: i32, %arg1: i32) -> (i32, i32) {
    %c0_i32 = arith.constant 0 : i32
    %c0_i32_0 = arith.constant 0 : i32
    %c0_i32_1 = arith.constant 0 : i32
    return %c0_i32, %c0_i32_0 : i32, i32
  }
  func.func @transform_5(%arg0: i32, %arg1: i32) -> (i32, i32) {
    %c0_i32 = arith.constant 0 : i32
    %c0_i32_0 = arith.constant 0 : i32
    %c0_i32_1 = arith.constant 0 : i32
    return %c0_i32, %c0_i32_0 : i32, i32
  }
  func.func @transform_6(%arg0: i32, %arg1: i32) -> (i32, i32) {
    %c0_i32 = arith.constant 0 : i32
    %c0_i32_0 = arith.constant 0 : i32
    %c0_i32_1 = arith.constant 0 : i32
    return %c0_i32, %c0_i32_0 : i32, i32
  }
  func.func @transform_7(%arg0: i32, %arg1: i32) -> (i32, i32, i32) {
    %c0_i32 = arith.constant 0 : i32
    %c0_i32_0 = arith.constant 0 : i32
    return %arg0, %c0_i32, %arg1 : i32, i32, i32
  }
}

</mosaic_0001>

<bundles_post_ra>
// kernel: tpu_custom_call.1
= control target key start
LH: loop header
LB: loop body
LE: loop exit
PB: predicated region body
PF: predicated region fallthrough
CT: control target
= control target key end

     0   :  { %12 = vsyncpa [#allocation3], 0  ;;  %s1371_s0 = inlined_call_operand.vmem [shape: f32[2,2,256], index: 0, kind: input, shape index: {}]   ;;  %s1372_s1 = inlined_call_operand.vmem [shape: f32[32,2], index: 1, kind: input, shape index: {}]   ;;  %s1373_s2 = inlined_call_operand.vmem [shape: f32[32,1], index: 2, kind: input, shape index: {}]   ;;  %s1374_s3 = inlined_call_operand.vmem [shape: f32[64,32], index: 3, kind: input, shape index: {}]   ;;  %s1375_s4 = inlined_call_operand.vmem [shape: f32[64,1], index: 4, kind: input, shape index: {}]   ;;  %s1376_s5 = inlined_call_operand.vmem [shape: f32[32,64], index: 5, kind: input, shape index: {}]   ;;  %s1377_s6 = inlined_call_operand.vmem [shape: f32[32,1], index: 6, kind: input, shape index: {}]   ;;  %s1378_s7 = inlined_call_operand.hbm [shape: f32[2,32,256], index: 7, kind: output, shape index: {}]  }
   0x1   :  { %14 = vsyncpa [#allocation3 + $0x1], 0  ;;  %s1136_s24 = smov 0   ;;  %s1138_s25 = smov 0  }
   0x2   :  { %s1140_s26 = smov 0   ;;  %s1142_s27 = smov 0  }
   0x3   :  { %s1144_s28 = smov 0   ;;  %s1146_s29 = smov 0  }
   0x4 LB: > { %s893_s30 = sadd.s32 4294967295, %s1088_s29   ;;  %s894_s8 = sadd.s32 4294967294, %s1088_s29   ;;  %s1088_s29 = sphi %s1146_s29, %s20_s29   ;;  %s1084_s28 = sphi %s1144_s28, %s1385_s28   ;;  %s1080_s27 = sphi %s1142_s27, %s1384_s27   ;;  %s1076_s26 = sphi %s1140_s26, %s1383_s26   ;;  %s1072_s25 = sphi %s1138_s25, %s1382_s25   ;;  %s1068_s24 = sphi %s1136_s24, %s1381_s24  }
   0x5   : > { %s32_s9 = sadd.s32 1, %s1084_s28  ;;  %s195_s10 = sadd.s32 1, %s1076_s26 }
   0x6   : > { %p34_p0 = scmp.ge.s32.totalorder %s32_s9, 2  ;;  %p205_p1 = scmp.ne.s32.totalorder %s1076_s26, %s1072_s25 }
   0x7   : > { %p206_p2 = scmp.eq.s32.totalorder %s893_s30, 1  ;;  %p211_p3 = scmp.ne.s32.totalorder %s1072_s25, %s1068_s24 }
   0x8   : > { %s1387_s9 = smov (%p34_p0, %s32_s9), 0  ;;  %p212_p5 = scmp.eq.s32.totalorder %s894_s8, 1 }
   0x9   : > { %p1176_p4 = por %p206_p2, %p205_p1  ;;  %s190_s12 = ssub.s32 %s1084_s28, %s1387_s9 }
   0xa   : > { %p897_p6 = scmp.ge.s32.totalorder %s1088_s29, 1  ;;  %p193_p7 = scmp.eq.s32.totalorder %s190_s12, 0 }
   0xb   : > { %p1183_p8 = por %p212_p5, %p211_p3  ;;  %p261_p9 = scmp.lt.s32.totalorder %s1088_s29, 3 }
   0xc   : > { %s1189_s14 = scalar_select %p193_p7, %s1076_s26, %s195_s10  }
   0xd   : > { %p262_p10 = pnand %p897_p6, %p261_p9 }
   0xe   : > { %v311_v0 = vld [vmem:[%s1372_s1 + $0x10] sm:$0xff] (!%p262_p10)  ;;  %v309_v1 = vld [vmem:[%s1372_s1] sm:$0xff] (!%p262_p10)  ;;  %v1090_v2 = vmov (!%p262_p10), 1   ;;  %v310_v3 = vld [vmem:[%s1372_s1 + $0x8] sm:$0xff] (!%p262_p10)  ;;  %v1091_v4 = vmov (!%p262_p10), 0   ;;  %v1092_v17 = vmov (!%p262_p10), 0.0   ;;  %v338_v23 = vlaneseq (!%p262_p10) }
   0xf   : > { %265 = sbr.rel (%p262_p10) target bundleno = 674 (0x2a2), region = 48  ;;  %1006 = vset.pattern.permute.xlu0 (!%p262_p10), %v1090_v2  ;;  %1004 = vset.pattern.permute.xlu1 (!%p262_p10), %v1090_v2  ;;  %v312_v5 = vld [vmem:[%s1372_s1 + $0x18] sm:$0xff] (!%p262_p10)  ;;  %v314_v6 = vld [vmem:[%s1373_s2 + $0x8] sm:$0xff] (!%p262_p10)  ;;  %v313_v7 = vld [vmem:[%s1373_s2] sm:$0xff] (!%p262_p10)  ;;  %p298_p11 = scmp.lt.s32.totalorder (!%p262_p10), %s1080_s27, 1  ;;  %vm506_vm0 = vcmask (!%p262_p10), 261120  }
  0x10   : > { %373 = vperm.xlu0 (!%p262_p10), %1006, %v311_v0   ;;  %365 = vperm.xlu1 (!%p262_p10), %1004, %v309_v1   ;;  %v458_v8 = vld [vmem:[%s1375_s4] sm:$0xff] (!%p262_p10)  ;;  %v315_v9 = vld [vmem:[%s1373_s2 + $0x10] sm:$0xff] (!%p262_p10)  ;;  %v316_v11 = vld [vmem:[%s1373_s2 + $0x18] sm:$0xff] (!%p262_p10)  ;;  %v339_v24 = vshrl.u32 (!%p262_p10), %v338_v23, 7  ;;  %vm688_vm1 = vcmask (!%p262_p10), 523264   ;;  %s294_s19 = sand.u32 (!%p262_p10), 1, %s1072_s25  }
  0x11   : > { %v460_v10 = vld [vmem:[%s1375_s4 + $0x10] sm:$0xff] (!%p262_p10)  ;;  %v462_v12 = vld [vmem:[%s1375_s4 + $0x20] sm:$0xff] (!%p262_p10)  ;;  %v459_v13 = vld [vmem:[%s1375_s4 + $0x8] sm:$0xff] (!%p262_p10)  ;;  %595 = vmatprep.mubr.f32.mxu0 (!%p262_p10), %v1092_v17  ;;  %765 = vmatprep.mubr.f32.mxu1 (!%p262_p10), %v1092_v17  ;;  %s919_s22 = sshll.u32 (!%p262_p10), %s1080_s27, 10  ;;  %s1093_s15 = smov (!%p262_p10), [#allocation2]  }
  0x12   : > { %v464_v14 = vld [vmem:[%s1375_s4 + $0x30] sm:$0xff] (!%p262_p10)  ;;  %v461_v15 = vld [vmem:[%s1375_s4 + $0x18] sm:$0xff] (!%p262_p10)  ;;  %v664_v16 = vld [vmem:[%s1377_s6] sm:$0xff] (!%p262_p10)  ;;  %v340_v27 = vsub.s32 (!%p262_p10), 0, %v339_v24  ;;  %v344_v28 = vsub.s32 (!%p262_p10), 2, %v339_v24  ;;  %v382_v29 = vsub.s32 (!%p262_p10), 1, %v339_v24  ;;  %s1319_s10 = scalar_lea.hbm (!%p262_p10), %s1378_s7, %s919_s22 }
  0x13   : > { %v463_v18 = vld [vmem:[%s1375_s4 + $0x28] sm:$0xff] (!%p262_p10)  ;;  %v666_v19 = vld [vmem:[%s1377_s6 + $0x10] sm:$0xff] (!%p262_p10)  ;;  %v465_v20 = vld [vmem:[%s1375_s4 + $0x38] sm:$0xff] (!%p262_p10)  ;;  %v386_v30 = vsub.s32 (!%p262_p10), 3, %v339_v24 }
  0x14   : > { %1007 = vset.pattern.permute.xlu0 (!%p262_p10), %v1091_v4  ;;  %369 = vperm.xlu1 (!%p262_p10), %1004, %v310_v3   ;;  %v665_v21 = vld [vmem:[%s1377_s6 + $0x8] sm:$0xff] (!%p262_p10)  ;;  %v667_v22 = vld [vmem:[%s1377_s6 + $0x18] sm:$0xff] (!%p262_p10) }
  0x15   : > { %319 = vperm.xlu0 (!%p262_p10), %1007, %v309_v1  }
  0x16   : > { %s299_s16 = scalar_select %p298_p11, %s1080_s27, 1 }
  0x17   : > { %s1325_s27 = scalar_lea.sflag [#allocation3], %s294_s19 }
  0x18   : > { %1005 = vset.pattern.permute.xlu1 %v1091_v4  ;;  %s918_s17 = sshll.u32 %s299_s16, 2  ;;  %s1014_s16 = sshll.u32 %s1093_s15, 4  ;;  %s1015_s16 = int_to_ptr.vmem [resolvable:$false] %s1014_s16 }
  0x19   : > { %324 = vperm.xlu0 %1007, %v310_v3   ;;  %334 = vperm.xlu1 %1005, %v312_v5   ;;  %s305_s20 = scalar_lea.vmem %s1371_s0, %s918_s17  ;;  %s1016_s17 = scalar_lea.vmem %s1015_s16, 2048 }
  0x1a   : > { %v308_v32 = vld [vmem:[%s305_s20] sm:$0xf]  ;;  %s898_s20 = sshll.u32 %s294_s19, 6 }
  0x1b   : > { %v341_v34 = vrot.slane %v308_v32, %v340_v27  ;;  %v345_v35 = vrot.slane %v308_v32, %v344_v28  ;;  %v383_v36 = vrot.slane %v308_v32, %v382_v29  ;;  %v387_v37 = vrot.slane %v308_v32, %v386_v30  ;;  %v451_v32 = vld [vmem:[%s1374_s3 + $0x8] sm:$0xff]  ;;  %s296_s21 = scalar_lea.vmem [#allocation2], %s898_s20 }
  0x1c   : > { %s814_s23 = sshll.u32 %s296_s21, 4  ;;  %s1321_s23 = int_to_ptr.vmem [resolvable:$true] %s814_s23 }
  0x1d   : > { %329 = vperm.xlu0 %1007, %v311_v0   ;;  %1008 = vset.pattern.permute.xlu1 %v1090_v2  ;;  %v351_v40 = vrot.slane %v341_v34, %v340_v27  ;;  %v355_v41 = vrot.slane %v345_v35, %v340_v27  ;;  %v393_v42 = vrot.slane %v383_v36, %v382_v29  ;;  %v453_v34 = vld [vmem:[%s1374_s3 + $0x18] sm:$0xff]  ;;  %v454_v35 = vld [vmem:[%s1374_s3 + $0x20] sm:$0xff]  ;;  %v455_v36 = vld [vmem:[%s1374_s3 + $0x28] sm:$0xff]  ;;  %s1010_s12 = scalar_lea.vmem %s1321_s23, 1024  ;;  %p1017_p1 = scmp.lt.s32.totalorder %s1321_s23, %s1015_s16 }
  0x1e   : > { %377 = vperm.xlu1 %1008, %v312_v5   ;;  %v397_v43 = vrot.slane %v387_v37, %v382_v29  ;;  %v456_v37 = vld [vmem:[%s1374_s3 + $0x30] sm:$0xff]  ;;  %p1011_p12 = scmp.ne.s32.totalorder %s1321_s23, %s1010_s12  ;;  %p1018_p2 = scmp.lt.s32.totalorder %s1016_s17, %s1010_s12 }
  0x20   : > { %p1012_p13 = pnand %p1011_p12, %p1176_p4  ;;  %p1019_p3 = por %p1018_p2, %p1017_p1 }
  0x21   : > { %421 = vperm.xlu0 %1007, %v314_v6  }
  0x22   : > { %1009 = vset.pattern.permute.xlu1 %v1091_v4  ;;  %p1013_p0 = pneg %p1012_p13 }
  0x23   : > { %416 = vperm.xlu1 %1009, %v313_v7  }
  0x24   : > { %p1020_p5 = pnand %p1019_p3, %p1013_p0 }
  0x25   : > { %468 = vperm.xlu0 %1007, %v458_v8  }
  0x27   : > { %426 = vperm.xlu1 %1009, %v315_v9  }
  0x29   : > { %478 = vperm.xlu0 %1007, %v460_v10  }
  0x2b   : > { %431 = vperm.xlu1 %1009, %v316_v11  }
  0x2d   : > { %488 = vperm.xlu0 %1007, %v462_v12  }
  0x2f   : > { %473 = vperm.xlu1 %1009, %v459_v13  }
  0x31   : > { %498 = vperm.xlu0 %1007, %v464_v14  }
  0x33   : > { %483 = vperm.xlu1 %1009, %v461_v15  }
  0x35   : > { %670 = vperm.xlu0 %1007, %v664_v16  }
  0x37   : > { %493 = vperm.xlu1 %1009, %v463_v18  }
  0x39   : > { %680 = vperm.xlu0 %1007, %v666_v19  }
  0x3b   : > { %503 = vperm.xlu1 %1009, %v465_v20  }
  0x3f   : > { %675 = vperm.xlu1 %1009, %v665_v21  }
  0x43   : > { %685 = vperm.xlu1 %1009, %v667_v22  }
  0x8f   : > { %v366_v25 = vpop.permute.xlu1 %365  ;;  %v374_v26 = vpop.permute.xlu0 %373 }
  0x90   : > { %v398_v52 = vmul.f32 %v393_v42, %v366_v25  ;;  %v399_v53 = vmul.f32 %v397_v43, %v366_v25  ;;  %v402_v2 = vmul.f32 %v393_v42, %v374_v26  ;;  %v403_v3 = vmul.f32 %v397_v43, %v374_v26 }
  0x93   : > { %v370_v31 = vpop.permute.xlu1 %369 }
  0x94   : > { %v320_v33 = vpop.permute.xlu0 %319  ;;  %v400_v47 = vmul.f32 %v393_v42, %v370_v31  ;;  %v401_v48 = vmul.f32 %v397_v43, %v370_v31  ;;  %v450_v31 = vld [vmem:[%s1374_s3] sm:$0xff] }
  0x95   : > { %v356_v49 = vmul.f32 %v351_v40, %v320_v33  ;;  %v357_v50 = vmul.f32 %v355_v41, %v320_v33  ;;  %v452_v33 = vld [vmem:[%s1374_s3 + $0x10] sm:$0xff] }
  0x97   : > { %v406_v59 = vadd.f32 %v398_v52, %v356_v49  ;;  %v407_v60 = vadd.f32 %v399_v53, %v357_v50 }
  0x98   : > { %v325_v38 = vpop.permute.xlu0 %324  ;;  %v335_v39 = vpop.permute.xlu1 %334 }
  0x99   : > { %v358_v44 = vmul.f32 %v351_v40, %v325_v38  ;;  %v359_v45 = vmul.f32 %v355_v41, %v325_v38  ;;  %v362_v10 = vmul.f32 %v351_v40, %v335_v39  ;;  %v363_v11 = vmul.f32 %v355_v41, %v335_v39  ;;  %v457_v38 = vld [vmem:[%s1374_s3 + $0x38] sm:$0xff] }
  0x9b   : > { %v408_v54 = vadd.f32 %v400_v47, %v358_v44  ;;  %v409_v55 = vadd.f32 %v401_v48, %v359_v45 }
  0x9c   : > { %v330_v46 = vpop.permute.xlu0 %329 }
  0x9d   : > { %v378_v51 = vpop.permute.xlu1 %377  ;;  %v360_v62 = vmul.f32 %v351_v40, %v330_v46  ;;  %v361_v63 = vmul.f32 %v355_v41, %v330_v46 }
  0x9e   : > { %v404_v4 = vmul.f32 %v393_v42, %v378_v51  ;;  %v405_v5 = vmul.f32 %v397_v43, %v378_v51 }
  0x9f   : > { %v410_v13 = vadd.f32 %v402_v2, %v360_v62  ;;  %v411_v14 = vadd.f32 %v403_v3, %v361_v63 }
  0xa0   : > { %v422_v56 = vpop.permute.xlu0 %421  ;;  %v412_v20 = vadd.f32 %v404_v4, %v362_v10  ;;  %v413_v21 = vadd.f32 %v405_v5, %v363_v11 }
  0xa1   : > { %v436_v57 = vadd.f32 %v422_v56, %v408_v54  ;;  %v437_v58 = vadd.f32 %v422_v56, %v409_v55 }
  0xa2   : > { %v417_v61 = vpop.permute.xlu1 %416 }
  0xa3   : > { %v434_v0 = vadd.f32 %v417_v61, %v406_v59  ;;  %v435_v1 = vadd.f32 %v417_v61, %v407_v60  ;;  %v444_v6 = vmax.f32 %v436_v57, 0.0  ;;  %v445_v9 = vmax.f32 %v437_v58, 0.0 }
  0xa4   : > { %v469_v41 = vpop.permute.xlu0 %468 }
  0xa5   : > { %v442_v7 = vmax.f32 %v434_v0, 0.0  ;;  %v443_v8 = vmax.f32 %v435_v1, 0.0 }
  0xa6   : > { %v427_v12 = vpop.permute.xlu1 %426 }
  0xa7   : > { %v920_v15 = vpack.c.bf16 %v445_v9, %v443_v8  ;;  %v922_v16 = vpack.c.bf16 %v444_v6, %v442_v7  ;;  %v438_v18 = vadd.f32 %v427_v12, %v410_v13  ;;  %v439_v19 = vadd.f32 %v427_v12, %v411_v14 }
  0xa8   : > { %v479_v56 = vpop.permute.xlu0 %478 }
  0xa9   : > { %921 = vmatprep.subr.bf16.mxu0 %v920_v15  ;;  %v446_v25 = vmax.f32 %v438_v18, 0.0  ;;  %v447_v26 = vmax.f32 %v439_v19, 0.0 }
  0xaa   : > { %v432_v22 = vpop.permute.xlu1 %431  ;;  %923 = vmatpush1.bf16.msra.mxu0 %v922_v16 }
  0xab   : > { %v440_v23 = vadd.f32 %v432_v22, %v412_v20  ;;  %v441_v24 = vadd.f32 %v432_v22, %v413_v21 }
  0xac   : > { %v489_v8 = vpop.permute.xlu0 %488 }
  0xad   : > { %v448_v27 = vmax.f32 %v440_v23, 0.0  ;;  %v449_v28 = vmax.f32 %v441_v24, 0.0 }
  0xae   : > { %v474_v43 = vpop.permute.xlu1 %473 }
  0xaf   : > { %v924_v29 = vpack.c.bf16 %v449_v28, %v447_v26  ;;  %v926_v30 = vpack.c.bf16 %v448_v27, %v446_v25 }
  0xb0   : > { %v499_v25 = vpop.permute.xlu0 %498 }
  0xb1   : > { %925 = vmatprep.subr.bf16.mxu0 %v924_v29 }
  0xb2   : > { %927 = vmatpush1.bf16.msra.mxu0 %v926_v30  ;;  %v484_v59 = vpop.permute.xlu1 %483 }
  0xb5   : > { %901 = vmatmul.mubr.msk.f32.vlgmr.msra.gmra.mrb[0].mxu0 %vm506_vm0, %v450_v31 }
  0xb6   : > { %601 = vmatprep.mubr.f32.mxu0 %v1092_v17  ;;  %v494_v11 = vpop.permute.xlu1 %493 }
  0xb9   : > { %902 = vmatmul.mubr.msk.f32.gmra.mrb[2].mxu0 %vm506_vm0, %v451_v32 }
  0xba   : > { %607 = vmatprep.mubr.f32.mxu0 %v1092_v17  ;;  %v504_v28 = vpop.permute.xlu1 %503 }
  0xbd   : > { %903 = vmatmul.mubr.msk.f32.gmra.mrb[4].mxu0 %vm506_vm0, %v452_v33 }
  0xbe   : > { %613 = vmatprep.mubr.f32.mxu0 %v1092_v17 }
  0xc1   : > { %904 = vmatmul.mubr.msk.f32.gmra.mrb[6].mxu0 %vm506_vm0, %v453_v34 }
  0xc2   : > { %619 = vmatprep.mubr.f32.mxu0 %v1092_v17 }
  0xc5   : > { %905 = vmatmul.mubr.msk.f32.gmra.mrb[8].mxu0 %vm506_vm0, %v454_v35 }
  0xc6   : > { %625 = vmatprep.mubr.f32.mxu0 %v1092_v17 }
  0xc9   : > { %906 = vmatmul.mubr.msk.f32.gmra.mrb[10].mxu0 %vm506_vm0, %v455_v36 }
  0xca   : > { %631 = vmatprep.mubr.f32.mxu0 %v1092_v17 }
  0xcd   : > { %907 = vmatmul.mubr.msk.f32.gmra.mrb[12].mxu0 %vm506_vm0, %v456_v37 }
  0xce   : > { %637 = vmatprep.mubr.f32.mxu0 %v1092_v17 }
  0xd1   : > { %908 = vmatmul.mubr.msk.f32.gmra.mrb[14].mxu0 %vm506_vm0, %v457_v38 }
 0x188   : > { %v597_v39 = vpop.f32.mrb[0].mxu0 }
 0x189   : > { %v599_v40 = vpop.f32.mrb[1].mxu0  ;;  %v598_v42 = vadd.f32 %v597_v39, %v469_v41 }
 0x18a   : > { %v600_v44 = vadd.f32 %v599_v40, %v469_v41  ;;  %v660_v40 = vld [vmem:[%s1376_s5] sm:$0xff]  ;;  %v661_v41 = vld [vmem:[%s1376_s5 + $0x8] sm:$0xff] }
 0x18b   : > { %v644_v49 = vmax.f32 %v598_v42, 0.0  ;;  %v662_v42 = vld [vmem:[%s1376_s5 + $0x10] sm:$0xff] }
 0x18c   : > { %v603_v45 = vpop.f32.mrb[2].mxu0  ;;  %v645_v51 = vmax.f32 %v600_v44, 0.0  ;;  %v671_v44 = vpop.permute.xlu0 %670 }
 0x18d   : > { %v604_v46 = vadd.f32 %v603_v45, %v474_v43  ;;  %v605_v47 = vpop.f32.mrb[3].mxu0 }
 0x18e   : > { %v606_v48 = vadd.f32 %v605_v47, %v474_v43  ;;  %v663_v43 = vld [vmem:[%s1376_s5 + $0x18] sm:$0xff] }
 0x18f   : > { %v646_v50 = vmax.f32 %v604_v46, 0.0 }
 0x190   : > { %v647_v52 = vmax.f32 %v606_v48, 0.0  ;;  %v609_v53 = vpop.f32.mrb[4].mxu0 }
 0x191   : > { %v611_v54 = vpop.f32.mrb[5].mxu0  ;;  %v930_v55 = vpack.c.bf16 %v646_v50, %v644_v49  ;;  %v610_v58 = vadd.f32 %v609_v53, %v479_v56  ;;  %v676_v49 = vpop.permute.xlu1 %675 }
 0x192   : > { %v928_v57 = vpack.c.bf16 %v647_v52, %v645_v51  ;;  %v612_v60 = vadd.f32 %v611_v54, %v479_v56  ;;  %v681_v53 = vpop.permute.xlu0 %680 }
 0x193   : > { %v648_v1 = vmax.f32 %v610_v58, 0.0 }
 0x194   : > { %v615_v61 = vpop.f32.mrb[6].mxu0  ;;  %929 = vmatprep.subr.bf16.mxu1 %v928_v57  ;;  %v649_v3 = vmax.f32 %v612_v60, 0.0 }
 0x195   : > { %v616_v62 = vadd.f32 %v615_v61, %v484_v59  ;;  %v617_v63 = vpop.f32.mrb[7].mxu0  ;;  %931 = vmatpush1.bf16.msra.mxu1 %v930_v55  ;;  %v686_v58 = vpop.permute.xlu1 %685 }
 0x196   : > { %v618_v0 = vadd.f32 %v617_v63, %v484_v59 }
 0x197   : > { %v650_v2 = vmax.f32 %v616_v62, 0.0 }
 0x198   : > { %v651_v4 = vmax.f32 %v618_v0, 0.0  ;;  %v621_v5 = vpop.f32.mrb[8].mxu0 }
 0x199   : > { %v934_v6 = vpack.c.bf16 %v650_v2, %v648_v1  ;;  %v623_v7 = vpop.f32.mrb[9].mxu0  ;;  %v622_v10 = vadd.f32 %v621_v5, %v489_v8 }
 0x19a   : > { %v932_v9 = vpack.c.bf16 %v651_v4, %v649_v3  ;;  %v624_v12 = vadd.f32 %v623_v7, %v489_v8 }
 0x19b   : > { %v652_v18 = vmax.f32 %v622_v10, 0.0 }
 0x19c   : > { %v627_v13 = vpop.f32.mrb[10].mxu0  ;;  %933 = vmatprep.subr.bf16.mxu1 %v932_v9  ;;  %v653_v20 = vmax.f32 %v624_v12, 0.0 }
 0x19d   : > { %v628_v14 = vadd.f32 %v627_v13, %v494_v11  ;;  %v629_v15 = vpop.f32.mrb[11].mxu0  ;;  %935 = vmatpush1.bf16.msra.mxu1 %v934_v6 }
 0x19e   : > { %v630_v16 = vadd.f32 %v629_v15, %v494_v11 }
 0x19f   : > { %v654_v19 = vmax.f32 %v628_v14, 0.0 }
 0x1a0   : > { %v655_v21 = vmax.f32 %v630_v16, 0.0  ;;  %v633_v22 = vpop.f32.mrb[12].mxu0 }
 0x1a1   : > { %v938_v23 = vpack.c.bf16 %v654_v19, %v652_v18  ;;  %v635_v24 = vpop.f32.mrb[13].mxu0  ;;  %v634_v27 = vadd.f32 %v633_v22, %v499_v25 }
 0x1a2   : > { %v936_v26 = vpack.c.bf16 %v655_v21, %v653_v20  ;;  %v636_v29 = vadd.f32 %v635_v24, %v499_v25 }
 0x1a3   : > { %v656_v34 = vmax.f32 %v634_v27, 0.0 }
 0x1a4   : > { %v639_v30 = vpop.f32.mrb[14].mxu0  ;;  %937 = vmatprep.subr.bf16.mxu1 %v936_v26  ;;  %v657_v36 = vmax.f32 %v636_v29, 0.0 }
 0x1a5   : > { %v640_v31 = vadd.f32 %v639_v30, %v504_v28  ;;  %v641_v32 = vpop.f32.mrb[15].mxu0  ;;  %939 = vmatpush1.bf16.msra.mxu1 %v938_v23 }
 0x1a6   : > { %v642_v33 = vadd.f32 %v641_v32, %v504_v28 }
 0x1a7   : > { %v658_v35 = vmax.f32 %v640_v31, 0.0 }
 0x1a8   : > { %v659_v37 = vmax.f32 %v642_v33, 0.0 }
 0x1a9   : > { %v942_v38 = vpack.c.bf16 %v658_v35, %v656_v34 }
 0x1aa   : > { %v940_v39 = vpack.c.bf16 %v659_v37, %v657_v36 }
 0x1ac   : > { %941 = vmatprep.subr.bf16.mxu1 %v940_v39 }
 0x1ad   : > { %943 = vmatpush1.bf16.msra.mxu1 %v942_v38 }
 0x1b0   : > { %909 = vmatmul.mubr.msk.f32.vlgmr.msra.gmra.mrb[0].mxu1 %vm688_vm1, %v660_v40 }
 0x1b1   : > { %771 = vmatprep.mubr.f32.mxu1 %v1092_v17 }
 0x1b4   : > { %910 = vmatmul.mubr.msk.f32.gmra.mrb[2].mxu1 %vm688_vm1, %v661_v41 }
 0x1b5   : > { %777 = vmatprep.mubr.f32.mxu1 %v1092_v17 }
 0x1b8   : > { %911 = vmatmul.mubr.msk.f32.gmra.mrb[4].mxu1 %vm688_vm1, %v662_v42 }
 0x1b9   : > { %783 = vmatprep.mubr.f32.mxu1 %v1092_v17 }
 0x1bc   : > { %912 = vmatmul.mubr.msk.f32.gmra.mrb[6].mxu1 %vm688_vm1, %v663_v43 }
 0x283   : > { %v767_v45 = vpop.f32.mrb[0].mxu1 }
 0x284   : > { %v768_v46 = vadd.f32 %v767_v45, %v671_v44  ;;  %v769_v47 = vpop.f32.mrb[1].mxu1 }
 0x285   : > { %v770_v48 = vadd.f32 %v769_v47, %v671_v44 }
 0x286   : > { %790 = vst [vmem:[%s296_s21] sm:$0xff] %v768_v46 }
 0x287   : > { %791 = vst [vmem:[%s296_s21 + $0x8] sm:$0xff] %v770_v48  ;;  %v773_v50 = vpop.f32.mrb[2].mxu1 }
 0x288   : > { %v774_v17 = vadd.f32 %v773_v50, %v676_v49  ;;  %v775_v51 = vpop.f32.mrb[3].mxu1 }
 0x289   : > { %v776_v52 = vadd.f32 %v775_v51, %v676_v49 }
 0x28a   : > { %792 = vst [vmem:[%s296_s21 + $0x10] sm:$0xff] %v774_v17 }
 0x28b   : > { %793 = vst [vmem:[%s296_s21 + $0x18] sm:$0xff] %v776_v52  ;;  %v779_v54 = vpop.f32.mrb[4].mxu1 }
 0x28c   : > { %v780_v55 = vadd.f32 %v779_v54, %v681_v53  ;;  %v781_v56 = vpop.f32.mrb[5].mxu1 }
 0x28d   : > { %v782_v57 = vadd.f32 %v781_v56, %v681_v53 }
 0x28e   : > { %794 = vst [vmem:[%s296_s21 + $0x20] sm:$0xff] %v780_v55 }
 0x28f   : > { %795 = vst [vmem:[%s296_s21 + $0x28] sm:$0xff] %v782_v57  ;;  %v785_v59 = vpop.f32.mrb[6].mxu1 }
 0x290   : > { %v786_v60 = vadd.f32 %v785_v59, %v686_v58  ;;  %v787_v61 = vpop.f32.mrb[7].mxu1 }
 0x291   : > { %v788_v62 = vadd.f32 %v787_v61, %v686_v58 }
 0x292   : > { %796 = vst [vmem:[%s296_s21 + $0x30] sm:$0xff] %v786_v60 }
 0x293   : > { %797 = vst [vmem:[%s296_s21 + $0x38] sm:$0xff] %v788_v62 }
 0x294   : > { %1023 = shalt.err (!%p1020_p5)
}
 0x295   : > { %s1024_s18 = scalar_lea.hbm %s1319_s10, 1024  ;;  %s1028_s21 = scalar_lea.hbm %s1378_s7, 2048 }
 0x296   : > { %p1025_p6 = scmp.ne.s32.totalorder %s1319_s10, %s1024_s18  ;;  %p1029_p10 = scmp.lt.u32.totalorder %s1319_s10, %s1378_s7 }
 0x297   : > { %p1030_p11 = scmp.lt.u32.totalorder %s1028_s21, %s1024_s18  ;;  %p1032_p13 = scmp.lt.u32.totalorder %s1024_s18, %s1319_s10 }
 0x298   : > { %p1026_p7 = pnand %p1025_p6, %p1176_p4 }
 0x299   : > { %p1031_p12 = por %p1030_p11, %p1029_p10 }
 0x29a   : > { %p1027_p9 = pneg %p1026_p7 }
 0x29b   : > { %p1033_p0 = por %p1032_p13, %p1031_p12 }
 0x29d   : > { %p1034_p1 = pnand %p1033_p0, %p1027_p9 }
 0x29f   : > { %1037 = shalt.err (!%p1034_p1)
}
 0x2a0   : > { %s1094_s8 = smov 256   ;;  %s1095_s12 = smov 16  }
 0x2a1   : > { %944 = dma.vmem_to_hbm [thread:$0]  (%p1176_p4), %s1321_s23, 1024, %s1319_s10, %s1325_s27, %s1094_s8, %s1094_s8, %s1095_s12  }
 0x2a2 PF: > { %p950_p2 = scmp.ge.s32.totalorder %s1088_s29, 2  ;;  %s829_s15 = sand.u32 1, %s1068_s24  }
 0x2a3   : > { %s830_s16 = scalar_lea.sflag [#allocation3], %s829_s15 }
 0x2a4   : > { %p947_p3 = pnand %p950_p2, %p1183_p8 }
 0x2a6   : > { %1063 = dma.done.wait (!%p947_p3), %s830_s16, 1024  }
 0x2a7   : > { %1065 = vsyncadd (!%p947_p3), %s830_s16, 4294966272  ;;  %s20_s29 = sadd.s32 1, %s1088_s29   ;;  %s1381_s24 = smov %s1072_s25 }
 0x2a8   : > { %p17_p5 = scmp.ge.s32.totalorder %s20_s29, 4   ;;  %s1382_s25 = smov %s1076_s26 }
 0x2a9   : > { %s1383_s26 = smov %s1189_s14  ;;  %s1384_s27 = smov %s1084_s28 }
 0x2aa   : > { %s1385_s28 = smov %s1387_s9  ;;  %19 = sbr.rel (!%p17_p5) target bundleno = 4 (0x4), region = 83 }
 0x2b1   :  { %835 = vsyncpa [#allocation3], 1 }
 0x2b2   :  { %837 = vsyncpa [#allocation3 + $0x1], 1 }

</bundles_post_ra>
